<compile_context>
chip_gen: v5e
topology: v5e:2x2
jax: 0.10.0
libtpu: 0.0.40
codegen_flags: <defaults>
</compile_context>

<pallas_src>
import functools
import math

import jax
import jax.numpy as jnp
from jax.experimental import pallas as pl
from jax.experimental.pallas import tpu as pltpu


# --------------------------------------------------------------------------- kernel
def _attention_kernel(xq_ref, xk_ref, xv_ref, wq_ref, wk_ref, wv_ref,
                      wo_ref, bo_ref, o_ref, *, heads):
    """Fused per-batch-element attention step (all heads handled in-kernel).

    Block shapes:
      xq/xk/xv : (1, n, d)        wq/wk/wv : (heads, d, dh)
      wo       : (heads, dh, d)   bo       : (1, d)
      o        : (1, n, d)   (written exactly once)
    """
    xq = xq_ref[0]                      # (n, d)
    xk = xk_ref[0]
    xv = xv_ref[0]

    # Accumulator starts at the output bias (hoisted broadcast, added once).
    y = jnp.broadcast_to(bo_ref[...], (xq.shape[0], bo_ref.shape[1])
                         ).astype(jnp.float32)

    # Static unroll over heads: each head is a chain of small 2-D MXU matmuls
    # on static sub-views of the resident weight slabs (zero-cost indexing).
    for h in range(heads):
        # Per-head projections (softmax scale already folded into wq on host).
        q = jnp.dot(xq, wq_ref[h], preferred_element_type=jnp.float32)   # (n, dh)
        k = jnp.dot(xk, wk_ref[h], preferred_element_type=jnp.float32)   # (n, dh)
        v = jnp.dot(xv, wv_ref[h], preferred_element_type=jnp.float32)   # (n, dh)

        # Scores + numerically-stable softmax.
        s = jax.lax.dot_general(q, k, (((1,), (1,)), ((), ())),
                                preferred_element_type=jnp.float32)       # (n, n)
        s = s - jnp.max(s, axis=-1, keepdims=True)
        e = jnp.exp(s)
        p = e * pl.reciprocal(jnp.sum(e, axis=-1, keepdims=True), approx=True)

        # Attention output for this head + its slice of the output projection.
        oh = jnp.dot(p, v, preferred_element_type=jnp.float32)           # (n, dh)
        y = y + jnp.dot(oh, wo_ref[h], preferred_element_type=jnp.float32)

    o_ref[0] = y


# --------------------------------------------------------------------------- wrapper
@functools.partial(jax.jit, static_argnames=("heads", "dim_head"))
def attention_forward(xq, xk, xv, Wq, Wk, Wv, Wo, bo, *, heads, dim_head):
    """Pallas implementation of Attention.forward(xq, xk, xv).

    Wq/Wk/Wv: (inner, dim) torch layout (no bias);  Wo: (dim, inner);  bo: (dim,).
    """
    b, n, d = xq.shape
    dh = dim_head
    scale = dh ** -0.5

    # One-time host-side re-layout (tiny): per-head weight slabs, scale folded in.
    wq_h = (Wq * scale).T.reshape(d, heads, dh).transpose(1, 0, 2)   # (h, d, dh)
    wk_h = Wk.T.reshape(d, heads, dh).transpose(1, 0, 2)             # (h, d, dh)
    wv_h = Wv.T.reshape(d, heads, dh).transpose(1, 0, 2)             # (h, d, dh)
    wo_h = Wo.T.reshape(heads, dh, d)                                # (h, dh, d)
    bo2 = bo.reshape(1, d)

    kernel = functools.partial(_attention_kernel, heads=heads)

    return pl.pallas_call(
        kernel,
        out_shape=jax.ShapeDtypeStruct((b, n, d), jnp.float32),
        grid=(b,),
        in_specs=[
            pl.BlockSpec((1, n, d), lambda i: (i, 0, 0)),        # xq
            pl.BlockSpec((1, n, d), lambda i: (i, 0, 0)),        # xk
            pl.BlockSpec((1, n, d), lambda i: (i, 0, 0)),        # xv
            pl.BlockSpec((heads, d, dh), lambda i: (0, 0, 0)),   # wq (scaled)
            pl.BlockSpec((heads, d, dh), lambda i: (0, 0, 0)),   # wk
            pl.BlockSpec((heads, d, dh), lambda i: (0, 0, 0)),   # wv
            pl.BlockSpec((heads, dh, d), lambda i: (0, 0, 0)),   # wo
            pl.BlockSpec((1, d), lambda i: (0, 0)),              # bo
        ],
        out_specs=pl.BlockSpec((1, n, d), lambda i: (i, 0, 0)),
        compiler_params=pltpu.CompilerParams(
            dimension_semantics=("parallel",)),
    )(xq, xk, xv, wq_h, wk_h, wv_h, wo_h, bo2)


# --------------------------------------------------------------------------- reference
def attention_ref(xq, xk, xv, Wq, Wk, Wv, Wo, bo, *, heads, dim_head):
    """Pure-JAX replica of the PyTorch module (for correctness checking)."""
    b, n, d = xq.shape
    scale = dim_head ** -0.5

    def proj(x, W):  # nn.Linear, no bias: x @ W.T
        return jnp.einsum("bnd,ed->bne", x, W)

    def split(t):
        return t.reshape(b, n, heads, dim_head).transpose(0, 2, 1, 3)

    q, k, v = split(proj(xq, Wq)), split(proj(xk, Wk)), split(proj(xv, Wv))
    dots = jnp.einsum("bhid,bhjd->bhij", q, k) * scale
    attn = jax.nn.softmax(dots, axis=-1)
    o = jnp.einsum("bhij,bhjd->bhid", attn, v)
    o = o.transpose(0, 2, 1, 3).reshape(b, n, heads * dim_head)
    return jnp.einsum("bne,de->bnd", o, Wo) + bo


# --------------------------------------------------------------------------- main
if __name__ == "__main__":
    B, N, DIM = 2, 16, 32
    HEADS, DIM_HEAD = 4, 16
    INNER = HEADS * DIM_HEAD

    key = jax.random.PRNGKey(0)
    kq, kk, kv, k1, k2, k3, k4, k5 = jax.random.split(key, 8)

    xq = jax.random.normal(kq, (B, N, DIM), jnp.float32)
    xk = jax.random.normal(kk, (B, N, DIM), jnp.float32)
    xv = jax.random.normal(kv, (B, N, DIM), jnp.float32)

    def uniform(k, shape, fan_in):
        s = 1.0 / math.sqrt(fan_in)
        return jax.random.uniform(k, shape, jnp.float32, minval=-s, maxval=s)

    Wq = uniform(k1, (INNER, DIM), DIM)       # to_q.weight
    Wk = uniform(k2, (INNER, DIM), DIM)       # to_k.weight
    Wv = uniform(k3, (INNER, DIM), DIM)       # to_v.weight
    Wo = uniform(k4, (DIM, INNER), INNER)     # to_out[0].weight
    bo = uniform(k5, (DIM,), INNER)           # to_out[0].bias

    out = attention_forward(xq, xk, xv, Wq, Wk, Wv, Wo, bo,
                            heads=HEADS, dim_head=DIM_HEAD)
    out = jax.block_until_ready(out)

    ref = attention_ref(xq, xk, xv, Wq, Wk, Wv, Wo, bo,
                        heads=HEADS, dim_head=DIM_HEAD)

    assert out.shape == (B, N, DIM) and out.dtype == jnp.float32
    assert bool(jnp.all(jnp.isfinite(out)))
    assert bool(jnp.allclose(out, ref, rtol=2e-2, atol=2e-2)), (
        float(jnp.max(jnp.abs(out - ref))))
    print("KERNEL_OK")
</pallas_src>

<mosaic_0001>
module attributes {stable_mosaic.version = 11 : i64} {
  func.func @_attention_kernel(%arg0: i32, %arg1: memref<1x16x32xf32, #tpu.memory_space<vmem>>, %arg2: memref<1x16x32xf32, #tpu.memory_space<vmem>>, %arg3: memref<1x16x32xf32, #tpu.memory_space<vmem>>, %arg4: memref<4x32x16xf32, #tpu.memory_space<vmem>>, %arg5: memref<4x32x16xf32, #tpu.memory_space<vmem>>, %arg6: memref<4x32x16xf32, #tpu.memory_space<vmem>>, %arg7: memref<4x16x32xf32, #tpu.memory_space<vmem>>, %arg8: memref<1x32xf32, #tpu.memory_space<vmem>>, %arg9: memref<1x16x32xf32, #tpu.memory_space<vmem>>) attributes {dimension_semantics = [#tpu.dimension_semantics<parallel>], iteration_bounds = array<i64: 2>, scalar_prefetch = 0 : i64, scratch_operands = 0 : i64, tpu.core_type = #tpu.core_type<tc>, window_params = [{transform_indices = @transform_0, window_bounds = array<i64: 1, 16, 32>}, {transform_indices = @transform_1, window_bounds = array<i64: 1, 16, 32>}, {transform_indices = @transform_2, window_bounds = array<i64: 1, 16, 32>}, {pipeline_mode = #tpu.pipeline_mode<synchronous>, transform_indices = @transform_3, window_bounds = array<i64: 4, 32, 16>}, {pipeline_mode = #tpu.pipeline_mode<synchronous>, transform_indices = @transform_4, window_bounds = array<i64: 4, 32, 16>}, {pipeline_mode = #tpu.pipeline_mode<synchronous>, transform_indices = @transform_5, window_bounds = array<i64: 4, 32, 16>}, {pipeline_mode = #tpu.pipeline_mode<synchronous>, transform_indices = @transform_6, window_bounds = array<i64: 4, 16, 32>}, {pipeline_mode = #tpu.pipeline_mode<synchronous>, transform_indices = @transform_7, window_bounds = array<i64: 1, 32>}, {transform_indices = @transform_8, window_bounds = array<i64: 1, 16, 32>}]} {
    %c0 = arith.constant 0 : index
    %c0_0 = arith.constant 0 : index
    %c0_1 = arith.constant 0 : index
    %0 = vector.load %arg1[%c0, %c0_0, %c0_1] : memref<1x16x32xf32, #tpu.memory_space<vmem>>, vector<1x16x32xf32>
    %1 = vector.shape_cast %0 : vector<1x16x32xf32> to vector<16x32xf32>
    %c0_2 = arith.constant 0 : index
    %c0_3 = arith.constant 0 : index
    %c0_4 = arith.constant 0 : index
    %2 = vector.load %arg2[%c0_2, %c0_3, %c0_4] : memref<1x16x32xf32, #tpu.memory_space<vmem>>, vector<1x16x32xf32>
    %3 = vector.shape_cast %2 : vector<1x16x32xf32> to vector<16x32xf32>
    %c0_5 = arith.constant 0 : index
    %c0_6 = arith.constant 0 : index
    %c0_7 = arith.constant 0 : index
    %4 = vector.load %arg3[%c0_5, %c0_6, %c0_7] : memref<1x16x32xf32, #tpu.memory_space<vmem>>, vector<1x16x32xf32>
    %5 = vector.shape_cast %4 : vector<1x16x32xf32> to vector<16x32xf32>
    %c0_8 = arith.constant 0 : index
    %c0_9 = arith.constant 0 : index
    %6 = vector.load %arg8[%c0_8, %c0_9] : memref<1x32xf32, #tpu.memory_space<vmem>>, vector<1x32xf32>
    %7 = vector.shape_cast %6 : vector<1x32xf32> to vector<1x32xf32>
    %8 = vector.broadcast %7 : vector<1x32xf32> to vector<16x32xf32>
    %c0_10 = arith.constant 0 : index
    %c0_11 = arith.constant 0 : index
    %c0_12 = arith.constant 0 : index
    %9 = vector.load %arg4[%c0_10, %c0_11, %c0_12] : memref<4x32x16xf32, #tpu.memory_space<vmem>>, vector<1x32x16xf32>
    %10 = vector.shape_cast %9 : vector<1x32x16xf32> to vector<32x16xf32>
    %cst = arith.constant dense<0.000000e+00> : vector<16x16xf32>
    %11 = tpu.matmul %1, %10, %cst {dimension_numbers = #tpu.dot_dimension_numbers<[1], [0], [0], [1], [0, 0, 1, 1], [], []>} : vector<16x32xf32>, vector<32x16xf32>, vector<16x16xf32> -> vector<16x16xf32>
    %c0_13 = arith.constant 0 : index
    %c0_14 = arith.constant 0 : index
    %c0_15 = arith.constant 0 : index
    %12 = vector.load %arg5[%c0_13, %c0_14, %c0_15] : memref<4x32x16xf32, #tpu.memory_space<vmem>>, vector<1x32x16xf32>
    %13 = vector.shape_cast %12 : vector<1x32x16xf32> to vector<32x16xf32>
    %cst_16 = arith.constant dense<0.000000e+00> : vector<16x16xf32>
    %14 = tpu.matmul %3, %13, %cst_16 {dimension_numbers = #tpu.dot_dimension_numbers<[1], [0], [0], [1], [0, 0, 1, 1], [], []>} : vector<16x32xf32>, vector<32x16xf32>, vector<16x16xf32> -> vector<16x16xf32>
    %c0_17 = arith.constant 0 : index
    %c0_18 = arith.constant 0 : index
    %c0_19 = arith.constant 0 : index
    %15 = vector.load %arg6[%c0_17, %c0_18, %c0_19] : memref<4x32x16xf32, #tpu.memory_space<vmem>>, vector<1x32x16xf32>
    %16 = vector.shape_cast %15 : vector<1x32x16xf32> to vector<32x16xf32>
    %cst_20 = arith.constant dense<0.000000e+00> : vector<16x16xf32>
    %17 = tpu.matmul %5, %16, %cst_20 {dimension_numbers = #tpu.dot_dimension_numbers<[1], [0], [0], [1], [0, 0, 1, 1], [], []>} : vector<16x32xf32>, vector<32x16xf32>, vector<16x16xf32> -> vector<16x16xf32>
    %cst_21 = arith.constant dense<0.000000e+00> : vector<16x16xf32>
    %18 = tpu.matmul %11, %14, %cst_21 {dimension_numbers = #tpu.dot_dimension_numbers<[1], [1], [0], [0], [0, 0, 1, 0], [], []>} : vector<16x16xf32>, vector<16x16xf32>, vector<16x16xf32> -> vector<16x16xf32>
    %cst_22 = arith.constant dense<0xFF800000> : vector<16xf32>
    %19 = vector.multi_reduction <maximumf>, %18, %cst_22 [1] : vector<16x16xf32> to vector<16xf32>
    %20 = vector.shape_cast %19 : vector<16xf32> to vector<16x1xf32>
    %21 = vector.broadcast %20 : vector<16x1xf32> to vector<16x16xf32>
    %22 = arith.subf %18, %21 : vector<16x16xf32>
    %23 = math.exp %22 : vector<16x16xf32>
    %cst_23 = arith.constant dense<0.000000e+00> : vector<16xf32>
    %24 = vector.multi_reduction <add>, %23, %cst_23 [1] : vector<16x16xf32> to vector<16xf32>
    %25 = vector.shape_cast %24 : vector<16xf32> to vector<16x1xf32>
    %26 = tpu.reciprocal %25 {approx = true} : vector<16x1xf32> -> vector<16x1xf32>
    %27 = vector.broadcast %26 : vector<16x1xf32> to vector<16x16xf32>
    %28 = arith.mulf %23, %27 : vector<16x16xf32>
    %cst_24 = arith.constant dense<0.000000e+00> : vector<16x16xf32>
    %29 = tpu.matmul %28, %17, %cst_24 {dimension_numbers = #tpu.dot_dimension_numbers<[1], [0], [0], [1], [0, 0, 1, 1], [], []>} : vector<16x16xf32>, vector<16x16xf32>, vector<16x16xf32> -> vector<16x16xf32>
    %c0_25 = arith.constant 0 : index
    %c0_26 = arith.constant 0 : index
    %c0_27 = arith.constant 0 : index
    %30 = vector.load %arg7[%c0_25, %c0_26, %c0_27] : memref<4x16x32xf32, #tpu.memory_space<vmem>>, vector<1x16x32xf32>
    %31 = vector.shape_cast %30 : vector<1x16x32xf32> to vector<16x32xf32>
    %cst_28 = arith.constant dense<0.000000e+00> : vector<16x32xf32>
    %32 = tpu.matmul %29, %31, %cst_28 {dimension_numbers = #tpu.dot_dimension_numbers<[1], [0], [0], [1], [0, 0, 1, 1], [], []>} : vector<16x16xf32>, vector<16x32xf32>, vector<16x32xf32> -> vector<16x32xf32>
    %33 = arith.addf %8, %32 : vector<16x32xf32>
    %c1 = arith.constant 1 : index
    %c0_29 = arith.constant 0 : index
    %c0_30 = arith.constant 0 : index
    %34 = vector.load %arg4[%c1, %c0_29, %c0_30] : memref<4x32x16xf32, #tpu.memory_space<vmem>>, vector<1x32x16xf32>
    %35 = vector.shape_cast %34 : vector<1x32x16xf32> to vector<32x16xf32>
    %cst_31 = arith.constant dense<0.000000e+00> : vector<16x16xf32>
    %36 = tpu.matmul %1, %35, %cst_31 {dimension_numbers = #tpu.dot_dimension_numbers<[1], [0], [0], [1], [0, 0, 1, 1], [], []>} : vector<16x32xf32>, vector<32x16xf32>, vector<16x16xf32> -> vector<16x16xf32>
    %c1_32 = arith.constant 1 : index
    %c0_33 = arith.constant 0 : index
    %c0_34 = arith.constant 0 : index
    %37 = vector.load %arg5[%c1_32, %c0_33, %c0_34] : memref<4x32x16xf32, #tpu.memory_space<vmem>>, vector<1x32x16xf32>
    %38 = vector.shape_cast %37 : vector<1x32x16xf32> to vector<32x16xf32>
    %cst_35 = arith.constant dense<0.000000e+00> : vector<16x16xf32>
    %39 = tpu.matmul %3, %38, %cst_35 {dimension_numbers = #tpu.dot_dimension_numbers<[1], [0], [0], [1], [0, 0, 1, 1], [], []>} : vector<16x32xf32>, vector<32x16xf32>, vector<16x16xf32> -> vector<16x16xf32>
    %c1_36 = arith.constant 1 : index
    %c0_37 = arith.constant 0 : index
    %c0_38 = arith.constant 0 : index
    %40 = vector.load %arg6[%c1_36, %c0_37, %c0_38] : memref<4x32x16xf32, #tpu.memory_space<vmem>>, vector<1x32x16xf32>
    %41 = vector.shape_cast %40 : vector<1x32x16xf32> to vector<32x16xf32>
    %cst_39 = arith.constant dense<0.000000e+00> : vector<16x16xf32>
    %42 = tpu.matmul %5, %41, %cst_39 {dimension_numbers = #tpu.dot_dimension_numbers<[1], [0], [0], [1], [0, 0, 1, 1], [], []>} : vector<16x32xf32>, vector<32x16xf32>, vector<16x16xf32> -> vector<16x16xf32>
    %cst_40 = arith.constant dense<0.000000e+00> : vector<16x16xf32>
    %43 = tpu.matmul %36, %39, %cst_40 {dimension_numbers = #tpu.dot_dimension_numbers<[1], [1], [0], [0], [0, 0, 1, 0], [], []>} : vector<16x16xf32>, vector<16x16xf32>, vector<16x16xf32> -> vector<16x16xf32>
    %cst_41 = arith.constant dense<0xFF800000> : vector<16xf32>
    %44 = vector.multi_reduction <maximumf>, %43, %cst_41 [1] : vector<16x16xf32> to vector<16xf32>
    %45 = vector.shape_cast %44 : vector<16xf32> to vector<16x1xf32>
    %46 = vector.broadcast %45 : vector<16x1xf32> to vector<16x16xf32>
    %47 = arith.subf %43, %46 : vector<16x16xf32>
    %48 = math.exp %47 : vector<16x16xf32>
    %cst_42 = arith.constant dense<0.000000e+00> : vector<16xf32>
    %49 = vector.multi_reduction <add>, %48, %cst_42 [1] : vector<16x16xf32> to vector<16xf32>
    %50 = vector.shape_cast %49 : vector<16xf32> to vector<16x1xf32>
    %51 = tpu.reciprocal %50 {approx = true} : vector<16x1xf32> -> vector<16x1xf32>
    %52 = vector.broadcast %51 : vector<16x1xf32> to vector<16x16xf32>
    %53 = arith.mulf %48, %52 : vector<16x16xf32>
    %cst_43 = arith.constant dense<0.000000e+00> : vector<16x16xf32>
    %54 = tpu.matmul %53, %42, %cst_43 {dimension_numbers = #tpu.dot_dimension_numbers<[1], [0], [0], [1], [0, 0, 1, 1], [], []>} : vector<16x16xf32>, vector<16x16xf32>, vector<16x16xf32> -> vector<16x16xf32>
    %c1_44 = arith.constant 1 : index
    %c0_45 = arith.constant 0 : index
    %c0_46 = arith.constant 0 : index
    %55 = vector.load %arg7[%c1_44, %c0_45, %c0_46] : memref<4x16x32xf32, #tpu.memory_space<vmem>>, vector<1x16x32xf32>
    %56 = vector.shape_cast %55 : vector<1x16x32xf32> to vector<16x32xf32>
    %cst_47 = arith.constant dense<0.000000e+00> : vector<16x32xf32>
    %57 = tpu.matmul %54, %56, %cst_47 {dimension_numbers = #tpu.dot_dimension_numbers<[1], [0], [0], [1], [0, 0, 1, 1], [], []>} : vector<16x16xf32>, vector<16x32xf32>, vector<16x32xf32> -> vector<16x32xf32>
    %58 = arith.addf %33, %57 : vector<16x32xf32>
    %c2 = arith.constant 2 : index
    %c0_48 = arith.constant 0 : index
    %c0_49 = arith.constant 0 : index
    %59 = vector.load %arg4[%c2, %c0_48, %c0_49] : memref<4x32x16xf32, #tpu.memory_space<vmem>>, vector<1x32x16xf32>
    %60 = vector.shape_cast %59 : vector<1x32x16xf32> to vector<32x16xf32>
    %cst_50 = arith.constant dense<0.000000e+00> : vector<16x16xf32>
    %61 = tpu.matmul %1, %60, %cst_50 {dimension_numbers = #tpu.dot_dimension_numbers<[1], [0], [0], [1], [0, 0, 1, 1], [], []>} : vector<16x32xf32>, vector<32x16xf32>, vector<16x16xf32> -> vector<16x16xf32>
    %c2_51 = arith.constant 2 : index
    %c0_52 = arith.constant 0 : index
    %c0_53 = arith.constant 0 : index
    %62 = vector.load %arg5[%c2_51, %c0_52, %c0_53] : memref<4x32x16xf32, #tpu.memory_space<vmem>>, vector<1x32x16xf32>
    %63 = vector.shape_cast %62 : vector<1x32x16xf32> to vector<32x16xf32>
    %cst_54 = arith.constant dense<0.000000e+00> : vector<16x16xf32>
    %64 = tpu.matmul %3, %63, %cst_54 {dimension_numbers = #tpu.dot_dimension_numbers<[1], [0], [0], [1], [0, 0, 1, 1], [], []>} : vector<16x32xf32>, vector<32x16xf32>, vector<16x16xf32> -> vector<16x16xf32>
    %c2_55 = arith.constant 2 : index
    %c0_56 = arith.constant 0 : index
    %c0_57 = arith.constant 0 : index
    %65 = vector.load %arg6[%c2_55, %c0_56, %c0_57] : memref<4x32x16xf32, #tpu.memory_space<vmem>>, vector<1x32x16xf32>
    %66 = vector.shape_cast %65 : vector<1x32x16xf32> to vector<32x16xf32>
    %cst_58 = arith.constant dense<0.000000e+00> : vector<16x16xf32>
    %67 = tpu.matmul %5, %66, %cst_58 {dimension_numbers = #tpu.dot_dimension_numbers<[1], [0], [0], [1], [0, 0, 1, 1], [], []>} : vector<16x32xf32>, vector<32x16xf32>, vector<16x16xf32> -> vector<16x16xf32>
    %cst_59 = arith.constant dense<0.000000e+00> : vector<16x16xf32>
    %68 = tpu.matmul %61, %64, %cst_59 {dimension_numbers = #tpu.dot_dimension_numbers<[1], [1], [0], [0], [0, 0, 1, 0], [], []>} : vector<16x16xf32>, vector<16x16xf32>, vector<16x16xf32> -> vector<16x16xf32>
    %cst_60 = arith.constant dense<0xFF800000> : vector<16xf32>
    %69 = vector.multi_reduction <maximumf>, %68, %cst_60 [1] : vector<16x16xf32> to vector<16xf32>
    %70 = vector.shape_cast %69 : vector<16xf32> to vector<16x1xf32>
    %71 = vector.broadcast %70 : vector<16x1xf32> to vector<16x16xf32>
    %72 = arith.subf %68, %71 : vector<16x16xf32>
    %73 = math.exp %72 : vector<16x16xf32>
    %cst_61 = arith.constant dense<0.000000e+00> : vector<16xf32>
    %74 = vector.multi_reduction <add>, %73, %cst_61 [1] : vector<16x16xf32> to vector<16xf32>
    %75 = vector.shape_cast %74 : vector<16xf32> to vector<16x1xf32>
    %76 = tpu.reciprocal %75 {approx = true} : vector<16x1xf32> -> vector<16x1xf32>
    %77 = vector.broadcast %76 : vector<16x1xf32> to vector<16x16xf32>
    %78 = arith.mulf %73, %77 : vector<16x16xf32>
    %cst_62 = arith.constant dense<0.000000e+00> : vector<16x16xf32>
    %79 = tpu.matmul %78, %67, %cst_62 {dimension_numbers = #tpu.dot_dimension_numbers<[1], [0], [0], [1], [0, 0, 1, 1], [], []>} : vector<16x16xf32>, vector<16x16xf32>, vector<16x16xf32> -> vector<16x16xf32>
    %c2_63 = arith.constant 2 : index
    %c0_64 = arith.constant 0 : index
    %c0_65 = arith.constant 0 : index
    %80 = vector.load %arg7[%c2_63, %c0_64, %c0_65] : memref<4x16x32xf32, #tpu.memory_space<vmem>>, vector<1x16x32xf32>
    %81 = vector.shape_cast %80 : vector<1x16x32xf32> to vector<16x32xf32>
    %cst_66 = arith.constant dense<0.000000e+00> : vector<16x32xf32>
    %82 = tpu.matmul %79, %81, %cst_66 {dimension_numbers = #tpu.dot_dimension_numbers<[1], [0], [0], [1], [0, 0, 1, 1], [], []>} : vector<16x16xf32>, vector<16x32xf32>, vector<16x32xf32> -> vector<16x32xf32>
    %83 = arith.addf %58, %82 : vector<16x32xf32>
    %c3 = arith.constant 3 : index
    %c0_67 = arith.constant 0 : index
    %c0_68 = arith.constant 0 : index
    %84 = vector.load %arg4[%c3, %c0_67, %c0_68] : memref<4x32x16xf32, #tpu.memory_space<vmem>>, vector<1x32x16xf32>
    %85 = vector.shape_cast %84 : vector<1x32x16xf32> to vector<32x16xf32>
    %cst_69 = arith.constant dense<0.000000e+00> : vector<16x16xf32>
    %86 = tpu.matmul %1, %85, %cst_69 {dimension_numbers = #tpu.dot_dimension_numbers<[1], [0], [0], [1], [0, 0, 1, 1], [], []>} : vector<16x32xf32>, vector<32x16xf32>, vector<16x16xf32> -> vector<16x16xf32>
    %c3_70 = arith.constant 3 : index
    %c0_71 = arith.constant 0 : index
    %c0_72 = arith.constant 0 : index
    %87 = vector.load %arg5[%c3_70, %c0_71, %c0_72] : memref<4x32x16xf32, #tpu.memory_space<vmem>>, vector<1x32x16xf32>
    %88 = vector.shape_cast %87 : vector<1x32x16xf32> to vector<32x16xf32>
    %cst_73 = arith.constant dense<0.000000e+00> : vector<16x16xf32>
    %89 = tpu.matmul %3, %88, %cst_73 {dimension_numbers = #tpu.dot_dimension_numbers<[1], [0], [0], [1], [0, 0, 1, 1], [], []>} : vector<16x32xf32>, vector<32x16xf32>, vector<16x16xf32> -> vector<16x16xf32>
    %c3_74 = arith.constant 3 : index
    %c0_75 = arith.constant 0 : index
    %c0_76 = arith.constant 0 : index
    %90 = vector.load %arg6[%c3_74, %c0_75, %c0_76] : memref<4x32x16xf32, #tpu.memory_space<vmem>>, vector<1x32x16xf32>
    %91 = vector.shape_cast %90 : vector<1x32x16xf32> to vector<32x16xf32>
    %cst_77 = arith.constant dense<0.000000e+00> : vector<16x16xf32>
    %92 = tpu.matmul %5, %91, %cst_77 {dimension_numbers = #tpu.dot_dimension_numbers<[1], [0], [0], [1], [0, 0, 1, 1], [], []>} : vector<16x32xf32>, vector<32x16xf32>, vector<16x16xf32> -> vector<16x16xf32>
    %cst_78 = arith.constant dense<0.000000e+00> : vector<16x16xf32>
    %93 = tpu.matmul %86, %89, %cst_78 {dimension_numbers = #tpu.dot_dimension_numbers<[1], [1], [0], [0], [0, 0, 1, 0], [], []>} : vector<16x16xf32>, vector<16x16xf32>, vector<16x16xf32> -> vector<16x16xf32>
    %cst_79 = arith.constant dense<0xFF800000> : vector<16xf32>
    %94 = vector.multi_reduction <maximumf>, %93, %cst_79 [1] : vector<16x16xf32> to vector<16xf32>
    %95 = vector.shape_cast %94 : vector<16xf32> to vector<16x1xf32>
    %96 = vector.broadcast %95 : vector<16x1xf32> to vector<16x16xf32>
    %97 = arith.subf %93, %96 : vector<16x16xf32>
    %98 = math.exp %97 : vector<16x16xf32>
    %cst_80 = arith.constant dense<0.000000e+00> : vector<16xf32>
    %99 = vector.multi_reduction <add>, %98, %cst_80 [1] : vector<16x16xf32> to vector<16xf32>
    %100 = vector.shape_cast %99 : vector<16xf32> to vector<16x1xf32>
    %101 = tpu.reciprocal %100 {approx = true} : vector<16x1xf32> -> vector<16x1xf32>
    %102 = vector.broadcast %101 : vector<16x1xf32> to vector<16x16xf32>
    %103 = arith.mulf %98, %102 : vector<16x16xf32>
    %cst_81 = arith.constant dense<0.000000e+00> : vector<16x16xf32>
    %104 = tpu.matmul %103, %92, %cst_81 {dimension_numbers = #tpu.dot_dimension_numbers<[1], [0], [0], [1], [0, 0, 1, 1], [], []>} : vector<16x16xf32>, vector<16x16xf32>, vector<16x16xf32> -> vector<16x16xf32>
    %c3_82 = arith.constant 3 : index
    %c0_83 = arith.constant 0 : index
    %c0_84 = arith.constant 0 : index
    %105 = vector.load %arg7[%c3_82, %c0_83, %c0_84] : memref<4x16x32xf32, #tpu.memory_space<vmem>>, vector<1x16x32xf32>
    %106 = vector.shape_cast %105 : vector<1x16x32xf32> to vector<16x32xf32>
    %cst_85 = arith.constant dense<0.000000e+00> : vector<16x32xf32>
    %107 = tpu.matmul %104, %106, %cst_85 {dimension_numbers = #tpu.dot_dimension_numbers<[1], [0], [0], [1], [0, 0, 1, 1], [], []>} : vector<16x16xf32>, vector<16x32xf32>, vector<16x32xf32> -> vector<16x32xf32>
    %108 = arith.addf %83, %107 : vector<16x32xf32>
    %c0_86 = arith.constant 0 : index
    %c0_87 = arith.constant 0 : index
    %c0_88 = arith.constant 0 : index
    %109 = vector.load %arg9[%c0_86, %c0_87, %c0_88] : memref<1x16x32xf32, #tpu.memory_space<vmem>>, vector<1x16x32xf32>
    %110 = vector.shape_cast %109 : vector<1x16x32xf32> to vector<16x32xf32>
    %111 = vector.shape_cast %108 : vector<16x32xf32> to vector<1x16x32xf32>
    tpu.vector_store %arg9[%c0_86, %c0_87, %c0_88], %111 {strides = array<i32>} : memref<1x16x32xf32, #tpu.memory_space<vmem>>, vector<1x16x32xf32>,
    return
  }
  func.func @transform_0(%arg0: i32) -> (i32, i32, i32) {
    %c0_i32 = arith.constant 0 : i32
    %c0_i32_0 = arith.constant 0 : i32
    %c0_i32_1 = arith.constant 0 : i32
    return %arg0, %c0_i32, %c0_i32_0 : i32, i32, i32
  }
  func.func @transform_1(%arg0: i32) -> (i32, i32, i32) {
    %c0_i32 = arith.constant 0 : i32
    %c0_i32_0 = arith.constant 0 : i32
    %c0_i32_1 = arith.constant 0 : i32
    return %arg0, %c0_i32, %c0_i32_0 : i32, i32, i32
  }
  func.func @transform_2(%arg0: i32) -> (i32, i32, i32) {
    %c0_i32 = arith.constant 0 : i32
    %c0_i32_0 = arith.constant 0 : i32
    %c0_i32_1 = arith.constant 0 : i32
    return %arg0, %c0_i32, %c0_i32_0 : i32, i32, i32
  }
  func.func @transform_3(%arg0: i32) -> (i32, i32, i32) {
    %c0_i32 = arith.constant 0 : i32
    %c0_i32_0 = arith.constant 0 : i32
    %c0_i32_1 = arith.constant 0 : i32
    %c0_i32_2 = arith.constant 0 : i32
    return %c0_i32, %c0_i32_0, %c0_i32_1 : i32, i32, i32
  }
  func.func @transform_4(%arg0: i32) -> (i32, i32, i32) {
    %c0_i32 = arith.constant 0 : i32
    %c0_i32_0 = arith.constant 0 : i32
    %c0_i32_1 = arith.constant 0 : i32
    %c0_i32_2 = arith.constant 0 : i32
    return %c0_i32, %c0_i32_0, %c0_i32_1 : i32, i32, i32
  }
  func.func @transform_5(%arg0: i32) -> (i32, i32, i32) {
    %c0_i32 = arith.constant 0 : i32
    %c0_i32_0 = arith.constant 0 : i32
    %c0_i32_1 = arith.constant 0 : i32
    %c0_i32_2 = arith.constant 0 : i32
    return %c0_i32, %c0_i32_0, %c0_i32_1 : i32, i32, i32
  }
  func.func @transform_6(%arg0: i32) -> (i32, i32, i32) {
    %c0_i32 = arith.constant 0 : i32
    %c0_i32_0 = arith.constant 0 : i32
    %c0_i32_1 = arith.constant 0 : i32
    %c0_i32_2 = arith.constant 0 : i32
    return %c0_i32, %c0_i32_0, %c0_i32_1 : i32, i32, i32
  }
  func.func @transform_7(%arg0: i32) -> (i32, i32) {
    %c0_i32 = arith.constant 0 : i32
    %c0_i32_0 = arith.constant 0 : i32
    %c0_i32_1 = arith.constant 0 : i32
    return %c0_i32, %c0_i32_0 : i32, i32
  }
  func.func @transform_8(%arg0: i32) -> (i32, i32, i32) {
    %c0_i32 = arith.constant 0 : i32
    %c0_i32_0 = arith.constant 0 : i32
    %c0_i32_1 = arith.constant 0 : i32
    return %arg0, %c0_i32, %c0_i32_0 : i32, i32, i32
  }
}

</mosaic_0001>

<bundles_post_ra>
// kernel: attention_forward.1
= control target key start
LH: loop header
LB: loop body
LE: loop exit
PB: predicated region body
PF: predicated region fallthrough
CT: control target
= control target key end

     0   :  { %13 = vsyncpa [#allocation3], 0  ;;  %s1982_s0 = inlined_call_operand.vmem [shape: f32[2,16,32], index: 0, kind: input, shape index: {}]   ;;  %s1983_s1 = inlined_call_operand.vmem [shape: f32[2,16,32], index: 1, kind: input, shape index: {}]   ;;  %s1984_s2 = inlined_call_operand.vmem [shape: f32[2,16,32], index: 2, kind: input, shape index: {}]   ;;  %s1985_s3 = inlined_call_operand.vmem [shape: f32[4,32,16], index: 3, kind: input, shape index: {}]   ;;  %s1986_s4 = inlined_call_operand.vmem [shape: f32[4,32,16], index: 4, kind: input, shape index: {}]   ;;  %s1987_s5 = inlined_call_operand.vmem [shape: f32[4,32,16], index: 5, kind: input, shape index: {}]   ;;  %s1988_s6 = inlined_call_operand.vmem [shape: f32[4,16,32], index: 6, kind: input, shape index: {}]   ;;  %s1989_s7 = inlined_call_operand.vmem [shape: f32[1,32], index: 7, kind: input, shape index: {}]   ;;  %s1990_s8 = inlined_call_operand.hbm [shape: f32[2,16,32], index: 8, kind: output, shape index: {}]  }
   0x1   :  { %15 = vsyncpa [#allocation3 + $0x1], 0  ;;  %s1593_s27 = smov 0   ;;  %s1595_s28 = smov 0  }
   0x2   :  { %s1597_s29 = smov 0   ;;  %s1599_s30 = smov 0  }
   0x3 LB: > { %s1614_s9 = sadd.s32 4294967295, %s1544_s30   ;;  %s1290_s10 = sadd.s32 4294967294, %s1544_s30   ;;  %s1544_s30 = sphi %s1599_s30, %s1996_s30   ;;  %s1540_s29 = sphi %s1597_s29, %s1995_s29   ;;  %s1536_s28 = sphi %s1595_s28, %s1994_s28   ;;  %s1532_s27 = sphi %s1593_s27, %s1993_s27  }
   0x4   : > { %s1618_s11 = sadd.s32 1, %s1544_s30   ;;  %s211_s12 = sadd.s32 1, %s1540_s29 }
   0x5   : > { %s208_s13 = ssub.s32 %s1544_s30, %s1618_s11  ;;  %p221_p0 = scmp.ne.s32.totalorder %s1540_s29, %s1536_s28 }
   0x6   : > { %p209_p1 = scmp.eq.s32.totalorder %s208_s13, 0  ;;  %p222_p2 = scmp.eq.s32.totalorder %s1614_s9, 1 }
   0x7   : > { %p227_p3 = scmp.ne.s32.totalorder %s1536_s28, %s1532_s27  ;;  %p228_p4 = scmp.eq.s32.totalorder %s1290_s10, 1 }
   0x8   : > { %s1629_s14 = scalar_select %p209_p1, %s1540_s29, %s211_s12  }
   0x9   : > { %p1631_p5 = por %p222_p2, %p221_p0  ;;  %p1635_p6 = por %p228_p4, %p227_p3 }
   0xa   : > { %p1293_p7 = scmp.ge.s32.totalorder %s1544_s30, 1  ;;  %p285_p8 = scmp.lt.s32.totalorder %s1544_s30, 3 }
   0xc   : > { %p286_p9 = pnand %p1293_p7, %p285_p8 }
   0xd   : > { %p329_p10 = scmp.lt.s32.totalorder (!%p286_p9), %s1614_s9, 1  ;;  %s326_s26 = sand.u32 (!%p286_p9), 1, %s1536_s28  }
   0xe   : > { %289 = sbr.rel (%p286_p9) target bundleno = 2410 (0x96a), region = 52 }
  0x13   : > { %v391_v0 = vld [vmem:[%s1986_s4 + $0x18] sm:$0xff]  ;;  %v390_v1 = vld [vmem:[%s1986_s4 + $0x10] sm:$0xff]  ;;  %v389_v4 = vld [vmem:[%s1986_s4 + $0x8] sm:$0xff]  ;;  %s330_s10 = scalar_select %p329_p10, %s1614_s9, 1  ;;  %vm358_vm0 = vcmask 261120   ;;  %vm454_vm1 = vcmask 130048  }
  0x14   : > { %410 = vmatpush.msra.mxu1 %v391_v0  ;;  %v357_v2 = vld [vmem:[%s1985_s3 + $0x18] sm:$0xff]  ;;  %v356_v3 = vld [vmem:[%s1985_s3 + $0x10] sm:$0xff]  ;;  %v355_v5 = vld [vmem:[%s1985_s3 + $0x8] sm:$0xff] }
  0x15   : > { %377 = vmatpush.msra.mxu0 %v357_v2  ;;  %v388_v6 = vld [vmem:[%s1986_s4] sm:$0xff]  ;;  %s1664_s19 = sshll.u32 %s330_s10, 4  ;;  %v424_v16 = vld [vmem:[%s1987_s5 + $0x18] sm:$0xff]  ;;  %v423_v17 = vld [vmem:[%s1987_s5 + $0x10] sm:$0xff] }
  0x16   : > { %411 = vmatpush.msra.mxu1 %v390_v1  ;;  %s338_s22 = scalar_lea.vmem %s1983_s1, %s1664_s19  ;;  %v354_v7 = vld [vmem:[%s1985_s3] sm:$0xff]  ;;  %s333_s12 = scalar_lea.vmem %s1982_s0, %s1664_s19  ;;  %443 = vmatpush.msra.mxu2 %v424_v16  ;;  %v422_v18 = vld [vmem:[%s1987_s5 + $0x8] sm:$0xff]  ;;  %v1324_v26 = vld [vmem:[%s1986_s4 + $0x38] sm:$0xff] }
  0x17   : > { %378 = vmatpush.msra.mxu0 %v356_v3  ;;  %v1677_v8 = vld [vmem:[%s338_s22] sm:$0xff]  ;;  %v1685_v10 = vld [vmem:[%s338_s22 + $0x8] sm:$0xff]  ;;  %s343_s24 = scalar_lea.vmem %s1984_s2, %s1664_s19  ;;  %v1323_v27 = vld [vmem:[%s1986_s4 + $0x30] sm:$0xff]  ;;  %s1294_s19 = sshll.u32 %s326_s26, 4 }
  0x18   : > { %412 = vmatpush.msra.mxu1 %v389_v4  ;;  %v1679_v9 = vld [vmem:[%s333_s12] sm:$0xff]  ;;  %v1687_v11 = vld [vmem:[%s333_s12 + $0x8] sm:$0xff]  ;;  %444 = vmatpush.msra.mxu2 %v423_v17  ;;  %v1318_v42 = vld [vmem:[%s1985_s3 + $0x38] sm:$0xff]  ;;  %s1407_s12 = sshll.u32 %s1614_s9, 4  ;;  %s328_s18 = scalar_lea.vmem [#allocation2], %s1294_s19 }
  0x19   : > { %379 = vmatpush.msra.mxu0 %v355_v5  ;;  %v421_v19 = vld [vmem:[%s1987_s5] sm:$0xff]  ;;  %v1717_v21 = vld [vmem:[%s343_s24 + $0x8] sm:$0xff]  ;;  %v1317_v43 = vld [vmem:[%s1985_s3 + $0x30] sm:$0xff]  ;;  %s1200_s17 = scalar_lea.hbm %s1990_s8, %s1407_s12  ;;  %s1201_s20 = sshll.u32 %s328_s18, 4  ;;  %s1202_s20 = int_to_ptr.vmem [resolvable:$true] %s1201_s20 }
  0x1a   : > { %413 = vmatpush.msra.mxu1 %v388_v6  ;;  %445 = vmatpush.msra.mxu2 %v422_v18  ;;  %v1713_v20 = vld [vmem:[%s343_s24] sm:$0xff]  ;;  %v1322_v28 = vld [vmem:[%s1986_s4 + $0x28] sm:$0xff]  ;;  %v1330_v60 = vld [vmem:[%s1987_s5 + $0x38] sm:$0xff]  ;;  %s1203_s21 = sshll.u32 %s1200_s17, 4  ;;  %s1189_s22 = scalar_lea.sflag [#allocation3], %s326_s26  ;;  %s1204_s21 = int_to_ptr.hbm [resolvable:$true] %s1203_s21 }
  0x1b   : > { %1303 = vmatmul.msk.f32.vlgmr.msra.gmra.mxu1 %vm358_vm0, %v1677_v8  ;;  %380 = vmatpush.msra.mxu0 %v354_v7  ;;  %v1321_v29 = vld [vmem:[%s1986_s4 + $0x20] sm:$0xff]  ;;  %v1316_v44 = vld [vmem:[%s1985_s3 + $0x28] sm:$0xff]  ;;  %v1329_v61 = vld [vmem:[%s1987_s5 + $0x30] sm:$0xff]  ;;  %s1496_s9 = sshra.s32 %s1204_s21, 4  ;;  %s1502_s19 = scalar_lea.hbm %s1990_s8, 32  ;;  %s1497_s9 = int_to_ptr.hbm [resolvable:$true] %s1496_s9 }
  0x1c   : > { %1301 = vmatmul.msk.f32.vlgmr.msra.gmra.mxu0 %vm358_vm0, %v1679_v9  ;;  %446 = vmatpush.msra.mxu2 %v421_v19  ;;  %v1315_v45 = vld [vmem:[%s1985_s3 + $0x20] sm:$0xff]  ;;  %v542_v46 = vld [vmem:[%s1988_s6 + $0x8] sm:$0xff]  ;;  %v1352_v6 = vld [vmem:[%s1986_s4 + $0x58] sm:$0xff]  ;;  %s1498_s23 = scalar_lea.hbm %s1497_s9, 16  ;;  %p1503_p0 = scmp.lt.s32.totalorder %s1497_s9, %s1990_s8 }
  0x1d   : > { %1305 = vmatmul.msk.f32.vlgmr.msra.gmra.mxu2 %vm358_vm0, %v1713_v20  ;;  %v541_v47 = vld [vmem:[%s1988_s6] sm:$0xff]  ;;  %563 = vmatpush.msrb.mxu1 %v542_v46  ;;  %v1328_v62 = vld [vmem:[%s1987_s5 + $0x28] sm:$0xff]  ;;  %v1351_v7 = vld [vmem:[%s1986_s4 + $0x50] sm:$0xff]  ;;  %p1499_p11 = scmp.ne.s32.totalorder %s1497_s9, %s1498_s23  ;;  %p1504_p1 = scmp.lt.s32.totalorder %s1502_s19, %s1498_s23 }
  0x1e   : > { %591 = vmatpush.msrb.mxu2 %v1318_v42  ;;  %v1327_v63 = vld [vmem:[%s1987_s5 + $0x20] sm:$0xff]  ;;  %v1358_v46 = vld [vmem:[%s1987_s5 + $0x58] sm:$0xff] }
  0x1f   : > { %564 = vmatpush.msrb.mxu1 %v541_v47  ;;  %v1357_v47 = vld [vmem:[%s1987_s5 + $0x50] sm:$0xff]  ;;  %p1500_p12 = pnand %p1499_p11, %p1631_p5  ;;  %p1505_p2 = por %p1504_p1, %p1503_p0 }
  0x20   : > { %592 = vmatpush.msrb.mxu2 %v1317_v43 }
  0x21   : > { %p1501_p13 = pneg %p1500_p12 }
  0x22   : > { %593 = vmatpush.msrb.mxu2 %v1316_v44 }
  0x23   : > { %1304 = vmatmul.msk.f32.gmra.mxu1 %vm358_vm0, %v1685_v10  ;;  %p1506_p3 = pnand %p1505_p2, %p1501_p13 }
  0x24   : > { %1302 = vmatmul.msk.f32.gmra.mxu0 %vm358_vm0, %v1687_v11  ;;  %594 = vmatpush.msrb.mxu2 %v1315_v45 }
  0x25   : > { %1306 = vmatmul.msk.f32.gmra.mxu2 %vm358_vm0, %v1717_v21 }
  0x2d   : > { %1319 = vmatmul.msk.f32.vlgmr.msrb.gmra.mxu2 %vm358_vm0, %v1679_v9 }
  0x35   : > { %1320 = vmatmul.msk.f32.gmra.mxu2 %vm358_vm0, %v1687_v11 }
  0x98   : > { %v415_v12 = vpop.f32.mrf.mxu1 }
  0x99   : > { %v382_v14 = vpop.f32.mrf.mxu0 }
  0xa0   : > { %v418_v13 = vpop.f32.mrf.mxu1  ;;  %v448_v31 = vpop.f32.mrf.mxu2 }
  0xa1   : > { %1307 = vmatpush.xpose.msk.msra.mxu3 %vm454_vm1, %v418_v13  ;;  %v385_v15 = vpop.f32.mrf.mxu0  ;;  %v1349_v13 = vld [vmem:[%s1986_s4 + $0x40] sm:$0xff] }
  0xa5   : > { %1308 = vmatpush.xpose.msk.msra.mxu3 %vm454_vm1, %v415_v12  ;;  %v1350_v12 = vld [vmem:[%s1986_s4 + $0x48] sm:$0xff] }
  0xa8   : > { %1309 = vmatmul.msk.f32.vlgmr.msra.gmra.mxu3 %vm454_vm1, %v382_v14  ;;  %v451_v35 = vpop.f32.mrf.mxu2 }
  0xa9   : > { %619 = vmatpush.msrb.mxu3 %v1324_v26  ;;  %532 = vmatpush.msrb.mxu0 %v451_v35 }
  0xab   : > { %620 = vmatpush.msrb.mxu3 %v1323_v27  ;;  %533 = vmatpush.msrb.mxu0 %v448_v31  ;;  %v1340_v31 = vld [vmem:[%s1988_s6 + $0x18] sm:$0xff] }
  0xad   : > { %621 = vmatpush.msrb.mxu3 %v1322_v28  ;;  %647 = vmatpush.msra.mxu0 %v1330_v60  ;;  %v1346_v28 = vld [vmem:[%s1985_s3 + $0x58] sm:$0xff] }
  0xaf   : > { %622 = vmatpush.msrb.mxu3 %v1321_v29  ;;  %648 = vmatpush.msra.mxu0 %v1329_v61  ;;  %v1345_v29 = vld [vmem:[%s1985_s3 + $0x50] sm:$0xff]  ;;  %v1380_v61 = vld [vmem:[%s1986_s4 + $0x78] sm:$0xff] }
  0xb0   : > { %1310 = vmatmul.msk.f32.gmra.mxu3 %vm454_vm1, %v385_v15  ;;  %v596_v58 = vpop.f32.mrf.mxu2 }
  0xb1   : > { %649 = vmatpush.msra.mxu0 %v1328_v62  ;;  %767 = vmatpush.msra.mxu3 %v1340_v31  ;;  %v1379_v62 = vld [vmem:[%s1986_s4 + $0x70] sm:$0xff] }
  0xb3   : > { %650 = vmatpush.msra.mxu0 %v1327_v63  ;;  %v1378_v63 = vld [vmem:[%s1986_s4 + $0x68] sm:$0xff] }
  0xb8   : > { %1325 = vmatmul.msk.f32.vlgmr.msrb.gmra.mxu3 %vm358_vm0, %v1677_v8  ;;  %v599_v59 = vpop.f32.mrf.mxu2 }
  0xc0   : > { %1326 = vmatmul.msk.f32.gmra.mxu3 %vm358_vm0, %v1685_v10 }
 0x12b   : > { %v484_v22 = vpop.f32.mrf.mxu3 }
 0x12c   : > { %v490_v23 = vsel %vm454_vm1, %v484_v22, -inf }
 0x12d   : > { %491 = vmax.xlane.f32.xlu0 %v490_v23 }
 0x133   : > { %v487_v24 = vpop.f32.mrf.mxu3 }
 0x134   : > { %v493_v25 = vsel %vm454_vm1, %v487_v24, -inf }
 0x135   : > { %494 = vmax.xlane.f32.xlu0 %v493_v25 }
 0x13b   : > { %v624_v49 = vpop.f32.mrf.mxu3 }
 0x143   : > { %v627_v53 = vpop.f32.mrf.mxu3 }
 0x144   : > { %1333 = vmatpush.xpose.msk.msra.mxu1 %vm454_vm1, %v627_v53 }
 0x148   : > { %1334 = vmatpush.xpose.msk.msra.mxu1 %vm454_vm1, %v624_v49  ;;  %v1356_v49 = vld [vmem:[%s1987_s5 + $0x48] sm:$0xff] }
 0x1a0   : > { %v492_v30 = vpop.xlane.xlu0 %491 }
 0x1a1   : > { %v496_v32 = vsub.f32 %v484_v22, %v492_v30  ;;  %v1344_v30 = vld [vmem:[%s1985_s3 + $0x48] sm:$0xff] }
 0x1a3   : > { %v498_v33 = vmul.f32 1.442695, %v496_v32  ;;  %v1339_v32 = vld [vmem:[%s1988_s6 + $0x10] sm:$0xff] }
 0x1a4   : > { %768 = vmatpush.msra.mxu3 %v1339_v32 }
 0x1a5   : > { %1450 = vpow2.f32 %v498_v33  ;;  %v1343_v33 = vld [vmem:[%s1985_s3 + $0x40] sm:$0xff] }
 0x1a8   : > { %v495_v34 = vpop.xlane.xlu0 %494 }
 0x1a9   : > { %v497_v36 = vsub.f32 %v487_v24, %v495_v34 }
 0x1ab   : > { %v1451_v37 = vpop.eup %1450  ;;  %v500_v38 = vmul.f32 1.442695, %v497_v36 }
 0x1ac   : > { %v502_v39 = vsel %vm454_vm1, %v1451_v37, 0.0 }
 0x1ad   : > { %1452 = vpow2.f32 %v500_v38  ;;  %503 = vadd.xlane.f32.xlu1 %v502_v39 }
 0x1b3   : > { %v1453_v40 = vpop.eup %1452 }
 0x1b4   : > { %v505_v41 = vsel %vm454_vm1, %v1453_v40, 0.0 }
 0x1b5   : > { %506 = vadd.xlane.f32.xlu1 %v505_v41 }
 0x220   : > { %v504_v48 = vpop.xlane.xlu1 %503 }
 0x221   : > { %1454 = vrcp.f32 %v504_v48  ;;  %v1449_v48 = vld [vmem:[%s1989_s7] ss:$0 sm:$0xff] }
 0x227   : > { %v1455_v50 = vpop.eup %1454 }
 0x228   : > { %v507_v51 = vpop.xlane.xlu1 %506  ;;  %v510_v52 = vmul.f32 %v1455_v50, %v1451_v37  ;;  %v1355_v50 = vld [vmem:[%s1987_s5 + $0x40] sm:$0xff] }
 0x229   : > { %1456 = vrcp.f32 %v507_v51 }
 0x22a   : > { %1311 = vmatmul.msk.f32.vlgmr.msrb.gmra.mxu0 %vm454_vm1, %v510_v52 }
 0x22b   : > { %795 = vmatpush.msrb.mxu0 %v1346_v28 }
 0x22d   : > { %796 = vmatpush.msrb.mxu0 %v1345_v29 }
 0x22f   : > { %v1457_v54 = vpop.eup %1456  ;;  %797 = vmatpush.msrb.mxu0 %v1344_v30 }
 0x230   : > { %v511_v55 = vmul.f32 %v1457_v54, %v1453_v40 }
 0x231   : > { %798 = vmatpush.msrb.mxu0 %v1343_v33  ;;  %v1386_v33 = vld [vmem:[%s1987_s5 + $0x78] sm:$0xff] }
 0x232   : > { %1312 = vmatmul.msk.f32.gmra.mxu0 %vm454_vm1, %v511_v55 }
 0x23a   : > { %1331 = vmatmul.msk.f32.vlgmr.msra.gmra.mxu0 %vm358_vm0, %v1713_v20 }
 0x242   : > { %1332 = vmatmul.msk.f32.gmra.mxu0 %vm358_vm0, %v1717_v21 }
 0x24a   : > { %1347 = vmatmul.msk.f32.vlgmr.msrb.gmra.mxu0 %vm358_vm0, %v1679_v9 }
 0x252   : > { %1348 = vmatmul.msk.f32.gmra.mxu0 %vm358_vm0, %v1687_v11 }
 0x2a7   : > { %v535_v56 = vpop.f32.mrf.mxu0 }
 0x2a8   : > { %1313 = vmatmul.msk.f32.vlgmr.msrb.gmra.mxu1 %vm454_vm1, %v535_v56 }
 0x2a9   : > { %823 = vmatpush.msrb.mxu1 %v1352_v6 }
 0x2ab   : > { %824 = vmatpush.msrb.mxu1 %v1351_v7 }
 0x2ad   : > { %825 = vmatpush.msrb.mxu1 %v1350_v12 }
 0x2af   : > { %v538_v57 = vpop.f32.mrf.mxu0  ;;  %826 = vmatpush.msrb.mxu1 %v1349_v13 }
 0x2b0   : > { %1314 = vmatmul.msk.f32.gmra.mxu1 %vm454_vm1, %v538_v57 }
 0x2b7   : > { %v652_v14 = vpop.f32.mrf.mxu0 }
 0x2b8   : > { %1335 = vmatmul.msk.f32.vlgmr.msra.gmra.mxu1 %vm454_vm1, %v596_v58 }
 0x2bf   : > { %v655_v17 = vpop.f32.mrf.mxu0 }
 0x2c0   : > { %1336 = vmatmul.msk.f32.gmra.mxu1 %vm454_vm1, %v599_v59  ;;  %735 = vmatpush.msra.mxu2 %v655_v17  ;;  %v1372_v17 = vld [vmem:[%s1985_s3 + $0x68] sm:$0xff] }
 0x2c2   : > { %736 = vmatpush.msra.mxu2 %v652_v14 }
 0x2c4   : > { %851 = vmatpush.msrb.mxu2 %v1358_v46 }
 0x2c6   : > { %852 = vmatpush.msrb.mxu2 %v1357_v47 }
 0x2c7   : > { %v800_v44 = vpop.f32.mrf.mxu0 }
 0x2c8   : > { %1353 = vmatmul.msk.f32.vlgmr.msrb.gmra.mxu1 %vm358_vm0, %v1677_v8  ;;  %853 = vmatpush.msrb.mxu2 %v1356_v49 }
 0x2ca   : > { %854 = vmatpush.msrb.mxu2 %v1355_v50 }
 0x2cf   : > { %v803_v45 = vpop.f32.mrf.mxu0 }
 0x2d0   : > { %1354 = vmatmul.msk.f32.gmra.mxu1 %vm358_vm0, %v1685_v10 }
 0x325   : > { %v1783_v0 = vpop.f32.mrf.mxu1 }
 0x326   : > { %v572_v51 = vadd.f32 %v1449_v48, %v1783_v0  ;;  %v1377_v0 = vld [vmem:[%s1986_s4 + $0x60] sm:$0xff] }
 0x32d   : > { %v1787_v1 = vpop.f32.mrf.mxu1 }
 0x32e   : > { %v573_v54 = vadd.f32 %v1449_v48, %v1787_v1 }
 0x335   : > { %v687_v2 = vpop.f32.mrf.mxu1 }
 0x336   : > { %v693_v3 = vsel %vm454_vm1, %v687_v2, -inf }
 0x337   : > { %694 = vmax.xlane.f32.xlu2 %v693_v3 }
 0x33d   : > { %v690_v4 = vpop.f32.mrf.mxu1 }
 0x33e   : > { %v696_v5 = vsel %vm454_vm1, %v690_v4, -inf }
 0x33f   : > { %697 = vmax.xlane.f32.xlu2 %v696_v5 }
 0x345   : > { %v828_v34 = vpop.f32.mrf.mxu1 }
 0x34d   : > { %v831_v36 = vpop.f32.mrf.mxu1 }
 0x34e   : > { %1361 = vmatpush.xpose.msk.msrb.mxu3 %vm454_vm1, %v831_v36  ;;  %v1383_v36 = vld [vmem:[%s1987_s5 + $0x60] sm:$0xff] }
 0x352   : > { %1362 = vmatpush.xpose.msk.msrb.mxu3 %vm454_vm1, %v828_v34  ;;  %v1385_v34 = vld [vmem:[%s1987_s5 + $0x70] sm:$0xff] }
 0x3aa   : > { %v695_v15 = vpop.xlane.xlu2 %694 }
 0x3ab   : > { %v699_v16 = vsub.f32 %v687_v2, %v695_v15 }
 0x3ad   : > { %v701_v18 = vmul.f32 1.442695, %v699_v16  ;;  %v1374_v16 = vld [vmem:[%s1985_s3 + $0x78] sm:$0xff] }
 0x3af   : > { %1458 = vpow2.f32 %v701_v18  ;;  %v1371_v18 = vld [vmem:[%s1985_s3 + $0x60] sm:$0xff] }
 0x3b2   : > { %v698_v19 = vpop.xlane.xlu2 %697 }
 0x3b3   : > { %v700_v22 = vsub.f32 %v690_v4, %v698_v19  ;;  %v1368_v19 = vld [vmem:[%s1988_s6 + $0x28] sm:$0xff] }
 0x3b4   : > { %971 = vmatpush.msra.mxu1 %v1368_v19 }
 0x3b5   : > { %v1459_v23 = vpop.eup %1458  ;;  %v703_v24 = vmul.f32 1.442695, %v700_v22  ;;  %v1367_v22 = vld [vmem:[%s1988_s6 + $0x20] sm:$0xff] }
 0x3b6   : > { %v705_v25 = vsel %vm454_vm1, %v1459_v23, 0.0  ;;  %972 = vmatpush.msra.mxu1 %v1367_v22 }
 0x3b7   : > { %1460 = vpow2.f32 %v703_v24  ;;  %706 = vadd.xlane.f32.xlu0 %v705_v25 }
 0x3bd   : > { %v1461_v26 = vpop.eup %1460 }
 0x3be   : > { %v708_v27 = vsel %vm454_vm1, %v1461_v26, 0.0 }
 0x3bf   : > { %709 = vadd.xlane.f32.xlu1 %v708_v27 }
 0x42a   : > { %v707_v35 = vpop.xlane.xlu0 %706 }
 0x42b   : > { %1462 = vrcp.f32 %v707_v35  ;;  %v1384_v35 = vld [vmem:[%s1987_s5 + $0x68] sm:$0xff] }
 0x431   : > { %v1463_v37 = vpop.eup %1462 }
 0x432   : > { %v713_v38 = vmul.f32 %v1463_v37, %v1459_v23  ;;  %v710_v39 = vpop.xlane.xlu1 %709 }
 0x433   : > { %1464 = vrcp.f32 %v710_v39 }
 0x434   : > { %1337 = vmatmul.msk.f32.vlgmr.msra.gmra.mxu2 %vm454_vm1, %v713_v38 }
 0x435   : > { %999 = vmatpush.msra.mxu2 %v1374_v16 }
 0x439   : > { %v1465_v40 = vpop.eup %1464 }
 0x43a   : > { %v714_v41 = vmul.f32 %v1465_v40, %v1461_v26 }
 0x43c   : > { %1338 = vmatmul.msk.f32.gmra.mxu2 %vm454_vm1, %v714_v41 }
 0x444   : > { %1359 = vmatmul.msk.f32.vlgmr.msrb.gmra.mxu2 %vm358_vm0, %v1713_v20 }
 0x44c   : > { %1360 = vmatmul.msk.f32.gmra.mxu2 %vm358_vm0, %v1717_v21 }
 0x4b7   : > { %v738_v42 = vpop.f32.mrf.mxu2 }
 0x4b8   : > { %1341 = vmatmul.msk.f32.vlgmr.msra.gmra.mxu3 %vm454_vm1, %v738_v42 }
 0x4b9   : > { %1027 = vmatpush.msra.mxu3 %v1380_v61 }
 0x4bb   : > { %1028 = vmatpush.msra.mxu3 %v1379_v62 }
 0x4bd   : > { %1029 = vmatpush.msra.mxu3 %v1378_v63 }
 0x4bf   : > { %v741_v43 = vpop.f32.mrf.mxu2  ;;  %1030 = vmatpush.msra.mxu3 %v1377_v0 }
 0x4c0   : > { %1342 = vmatmul.msk.f32.gmra.mxu3 %vm454_vm1, %v741_v43 }
 0x4c7   : > { %v856_v2 = vpop.f32.mrf.mxu2 }
 0x4c8   : > { %1363 = vmatmul.msk.f32.vlgmr.msrb.gmra.mxu3 %vm454_vm1, %v800_v44 }
 0x4cf   : > { %v859_v6 = vpop.f32.mrf.mxu2 }
 0x4d0   : > { %1364 = vmatmul.msk.f32.gmra.mxu3 %vm454_vm1, %v803_v45  ;;  %939 = vmatpush.msra.mxu0 %v859_v6 }
 0x4d2   : > { %940 = vmatpush.msra.mxu0 %v856_v2 }
 0x4d4   : > { %1055 = vmatpush.msrb.mxu0 %v1386_v33 }
 0x4d6   : > { %1056 = vmatpush.msrb.mxu0 %v1385_v34 }
 0x4d8   : > { %1381 = vmatmul.msk.f32.vlgmr.msra.gmra.mxu3 %vm358_vm0, %v1677_v8  ;;  %1057 = vmatpush.msrb.mxu0 %v1384_v35 }
 0x4da   : > { %1058 = vmatpush.msrb.mxu0 %v1383_v36 }
 0x4e0   : > { %1382 = vmatmul.msk.f32.gmra.mxu3 %vm358_vm0, %v1685_v10  ;;  %v1373_v10 = vld [vmem:[%s1985_s3 + $0x70] sm:$0xff] }
 0x4e1   : > { %1000 = vmatpush.msra.mxu2 %v1373_v10 }
 0x4e3   : > { %1001 = vmatpush.msra.mxu2 %v1372_v17 }
 0x4e5   : > { %1002 = vmatpush.msra.mxu2 %v1371_v18 }
 0x4e6   : > { %1375 = vmatmul.msk.f32.vlgmr.msra.gmra.mxu2 %vm358_vm0, %v1679_v9 }
 0x4ee   : > { %1376 = vmatmul.msk.f32.gmra.mxu2 %vm358_vm0, %v1687_v11 }
 0x53b   : > { %v770_v52 = vpop.f32.mrf.mxu3 }
 0x53c   : > { %v1857_v53 = vadd.f32 %v770_v52, %v572_v51 }
 0x543   : > { %v773_v55 = vpop.f32.mrf.mxu3 }
 0x544   : > { %v1862_v56 = vadd.f32 %v773_v55, %v573_v54  ;;  %v1396_v55 = vld [vmem:[%s1988_s6 + $0x38] sm:$0xff] }
 0x545   : > { %1175 = vmatpush.msrb.mxu3 %v1396_v55 }
 0x54b   : > { %v891_v57 = vpop.f32.mrf.mxu3 }
 0x54c   : > { %v897_v58 = vsel %vm454_vm1, %v891_v57, -inf }
 0x54d   : > { %898 = vmax.xlane.f32.xlu2 %v897_v58 }
 0x553   : > { %v894_v59 = vpop.f32.mrf.mxu3 }
 0x554   : > { %v900_v60 = vsel %vm454_vm1, %v894_v59, -inf }
 0x555   : > { %901 = vmax.xlane.f32.xlu0 %v900_v60 }
 0x55b   : > { %v1032_v24 = vpop.f32.mrf.mxu3 }
 0x563   : > { %v1035_v9 = vpop.f32.mrf.mxu3 }
 0x564   : > { %1389 = vmatpush.xpose.msk.msrb.mxu1 %vm454_vm1, %v1035_v9 }
 0x568   : > { %1390 = vmatpush.xpose.msk.msrb.mxu1 %vm454_vm1, %v1032_v24 }
 0x569   : > { %v1004_v31 = vpop.f32.mrf.mxu2 }
 0x571   : > { %v1007_v32 = vpop.f32.mrf.mxu2 }
 0x5c0   : > { %v899_v1 = vpop.xlane.xlu2 %898 }
 0x5c1   : > { %v903_v3 = vsub.f32 %v891_v57, %v899_v1 }
 0x5c3   : > { %v905_v4 = vmul.f32 1.442695, %v903_v3 }
 0x5c5   : > { %1466 = vpow2.f32 %v905_v4 }
 0x5c8   : > { %v902_v5 = vpop.xlane.xlu0 %901 }
 0x5c9   : > { %v904_v7 = vsub.f32 %v894_v59, %v902_v5 }
 0x5cb   : > { %v1467_v12 = vpop.eup %1466  ;;  %v907_v13 = vmul.f32 1.442695, %v904_v7 }
 0x5cc   : > { %v909_v14 = vsel %vm454_vm1, %v1467_v12, 0.0 }
 0x5cd   : > { %1468 = vpow2.f32 %v907_v13  ;;  %910 = vadd.xlane.f32.xlu1 %v909_v14 }
 0x5d3   : > { %v1469_v8 = vpop.eup %1468 }
 0x5d4   : > { %v912_v15 = vsel %vm454_vm1, %v1469_v8, 0.0 }
 0x5d5   : > { %913 = vadd.xlane.f32.xlu2 %v912_v15 }
 0x640   : > { %v911_v23 = vpop.xlane.xlu1 %910 }
 0x641   : > { %1470 = vrcp.f32 %v911_v23 }
 0x647   : > { %v1471_v25 = vpop.eup %1470 }
 0x648   : > { %v917_v26 = vmul.f32 %v1471_v25, %v1467_v12  ;;  %v914_v27 = vpop.xlane.xlu2 %913 }
 0x649   : > { %1472 = vrcp.f32 %v914_v27 }
 0x64a   : > { %1365 = vmatmul.msk.f32.vlgmr.msra.gmra.mxu0 %vm454_vm1, %v917_v26 }
 0x64f   : > { %v1473_v28 = vpop.eup %1472 }
 0x650   : > { %v918_v29 = vmul.f32 %v1473_v28, %v1469_v8 }
 0x652   : > { %1366 = vmatmul.msk.f32.gmra.mxu0 %vm454_vm1, %v918_v29 }
 0x65a   : > { %1387 = vmatmul.msk.f32.vlgmr.msrb.gmra.mxu0 %vm358_vm0, %v1713_v20 }
 0x662   : > { %1388 = vmatmul.msk.f32.gmra.mxu0 %vm358_vm0, %v1717_v21 }
 0x6c7   : > { %v942_v30 = vpop.f32.mrf.mxu0 }
 0x6c8   : > { %1369 = vmatmul.msk.f32.vlgmr.msra.gmra.mxu1 %vm454_vm1, %v942_v30 }
 0x6cf   : > { %v945_v11 = vpop.f32.mrf.mxu0 }
 0x6d0   : > { %1370 = vmatmul.msk.f32.gmra.mxu1 %vm454_vm1, %v945_v11 }
 0x6d7   : > { %v1060_v45 = vpop.f32.mrf.mxu0 }
 0x6d8   : > { %1391 = vmatmul.msk.f32.vlgmr.msrb.gmra.mxu1 %vm454_vm1, %v1004_v31 }
 0x6df   : > { %v1063_v48 = vpop.f32.mrf.mxu0 }
 0x6e0   : > { %1392 = vmatmul.msk.f32.gmra.mxu1 %vm454_vm1, %v1007_v32  ;;  %1143 = vmatpush.msrb.mxu2 %v1063_v48 }
 0x6e2   : > { %1144 = vmatpush.msrb.mxu2 %v1060_v45 }
 0x745   : > { %v974_v37 = vpop.f32.mrf.mxu1 }
 0x746   : > { %v980_v38 = vadd.f32 %v974_v37, %v1857_v53 }
 0x74d   : > { %v977_v39 = vpop.f32.mrf.mxu1 }
 0x74e   : > { %v981_v40 = vadd.f32 %v977_v39, %v1862_v56  ;;  %v1395_v56 = vld [vmem:[%s1988_s6 + $0x30] sm:$0xff] }
 0x74f   : > { %1176 = vmatpush.msrb.mxu3 %v1395_v56 }
 0x755   : > { %v1095_v41 = vpop.f32.mrf.mxu1 }
 0x756   : > { %v1101_v42 = vsel %vm454_vm1, %v1095_v41, -inf }
 0x757   : > { %1102 = vmax.xlane.f32.xlu0 %v1101_v42 }
 0x75d   : > { %v1098_v43 = vpop.f32.mrf.mxu1 }
 0x75e   : > { %v1104_v44 = vsel %vm454_vm1, %v1098_v43, -inf }
 0x75f   : > { %1105 = vmax.xlane.f32.xlu1 %v1104_v44 }
 0x7ca   : > { %v1103_v46 = vpop.xlane.xlu0 %1102 }
 0x7cb   : > { %v1107_v47 = vsub.f32 %v1095_v41, %v1103_v46 }
 0x7cd   : > { %v1109_v49 = vmul.f32 1.442695, %v1107_v47 }
 0x7cf   : > { %1474 = vpow2.f32 %v1109_v49 }
 0x7d2   : > { %v1106_v20 = vpop.xlane.xlu1 %1105 }
 0x7d3   : > { %v1108_v50 = vsub.f32 %v1098_v43, %v1106_v20 }
 0x7d5   : > { %v1475_v51 = vpop.eup %1474  ;;  %v1111_v21 = vmul.f32 1.442695, %v1108_v50 }
 0x7d6   : > { %v1113_v52 = vsel %vm454_vm1, %v1475_v51, 0.0 }
 0x7d7   : > { %1476 = vpow2.f32 %v1111_v21  ;;  %1114 = vadd.xlane.f32.xlu2 %v1113_v52 }
 0x7dd   : > { %v1477_v53 = vpop.eup %1476 }
 0x7de   : > { %v1116_v54 = vsel %vm454_vm1, %v1477_v53, 0.0 }
 0x7df   : > { %1117 = vadd.xlane.f32.xlu0 %v1116_v54 }
 0x84a   : > { %v1115_v57 = vpop.xlane.xlu2 %1114 }
 0x84b   : > { %1478 = vrcp.f32 %v1115_v57 }
 0x851   : > { %v1479_v58 = vpop.eup %1478 }
 0x852   : > { %v1121_v59 = vmul.f32 %v1479_v58, %v1475_v51  ;;  %v1118_v60 = vpop.xlane.xlu0 %1117 }
 0x853   : > { %1480 = vrcp.f32 %v1118_v60 }
 0x854   : > { %1393 = vmatmul.msk.f32.vlgmr.msrb.gmra.mxu2 %vm454_vm1, %v1121_v59 }
 0x859   : > { %v1481_v61 = vpop.eup %1480 }
 0x85a   : > { %v1122_v62 = vmul.f32 %v1481_v61, %v1477_v53 }
 0x85c   : > { %1394 = vmatmul.msk.f32.gmra.mxu2 %vm454_vm1, %v1122_v62 }
 0x8d7   : > { %v1146_v63 = vpop.f32.mrf.mxu2 }
 0x8d8   : > { %1397 = vmatmul.msk.f32.vlgmr.msrb.gmra.mxu3 %vm454_vm1, %v1146_v63 }
 0x8df   : > { %v1149_v0 = vpop.f32.mrf.mxu2 }
 0x8e0   : > { %1398 = vmatmul.msk.f32.gmra.mxu3 %vm454_vm1, %v1149_v0 }
 0x95b   : > { %v1178_v1 = vpop.f32.mrf.mxu3 }
 0x95c   : > { %v1184_v2 = vadd.f32 %v1178_v1, %v980_v38 }
 0x95e   : > { %1186 = vst.msk [vmem:[%s328_s18] sm:$0xff] %vm358_vm0, %v1184_v2 }
 0x963   : > { %v1181_v3 = vpop.f32.mrf.mxu3 }
 0x964   : > { %v1185_v4 = vadd.f32 %v1181_v3, %v981_v40 }
 0x966   : > { %1187 = vst.msk [vmem:[%s328_s18 + $0x8] sm:$0xff] %vm358_vm0, %v1185_v4 }
 0x967   : > { %1509 = shalt.err (!%p1506_p3)
}
 0x968   : > { %s1546_s26 = smov 128   ;;  %s1547_s13 = smov 8  }
 0x969   : > { %1408 = dma.vmem_to_hbm [thread:$0]  (%p1631_p5), %s1202_s20, 256, %s1204_s21, %s1189_s22, %s1546_s26, %s1546_s26, %s1547_s13  }
 0x96a PF: > { %p1414_p4 = scmp.ge.s32.totalorder %s1544_s30, 2  ;;  %s1218_s17 = sand.u32 1, %s1532_s27  }
 0x96b   : > { %s1219_s18 = scalar_lea.sflag [#allocation3], %s1218_s17 }
 0x96c   : > { %p1411_p7 = pnand %p1414_p4, %p1635_p6 }
 0x96e   : > { %p1412_p8 = pneg %p1411_p7 }
 0x970   : > { %1527 = dma.done.wait (%p1412_p8), %s1219_s18, 256  }
 0x971   : > { %1529 = vsyncadd (%p1412_p8), %s1219_s18, 4294967040  ;;  %p18_p9 = scmp.ge.s32.totalorder %s1618_s11, 4   ;;  %s1993_s27 = smov %s1536_s28 }
 0x972   : > { %s1994_s28 = smov %s1540_s29  ;;  %s1995_s29 = smov %s1629_s14 }
 0x973   : > { %s1996_s30 = smov %s1618_s11  ;;  %20 = sbr.rel (!%p18_p9) target bundleno = 3 (0x3), region = 105 }
 0x978   :  { %1225 = vsyncpa [#allocation3], 1 }
 0x979   :  { %1227 = vsyncpa [#allocation3 + $0x1], 1 }

</bundles_post_ra>
